<compile_context>
chip_gen: v6e
topology: v6e:2x2x1
jax: 0.10.0
libtpu: 0.0.40
codegen_flags: <defaults>
</compile_context>

<pallas_src>
import functools

import jax
import jax.numpy as jnp
from jax import lax
from jax.experimental import pallas as pl
from jax.experimental.pallas import tpu as pltpu


def _round_up(x, m):
    return ((x + m - 1) // m) * m


def score_predictor_kernel(
    o_real,        # static: number of real (unpadded) output classes
    x_ref,         # (TB, Dp) bf16  fusion input tile (streamed)
    thr_ref,       # (1,  Dp) f32   spike threshold (+1e30 in padded lanes)
    w_ih_ref,      # (Dp, Dp) bf16  spike input->hidden weights
    w_fused_ref,   # (Dp, Hp) bf16  W_ho @ W1 folded offline
    b1_ref,        # (1,  Hp) f32   scorer Linear1 bias
    w2_ref,        # (Hp, Op) bf16  scorer Linear2 weight (no bias)
    out_ref,       # (TB, Op) f32   softmax scores (padded lanes -> 0)
):
    x = x_ref[...]
    thr = thr_ref[...]            # (1, Dp); bf16 x upcasts exactly for the compare

    # ---- SpikeNNModel ----
    # ScorePredictor constructs it with hidden_dim == input_dim, so the single
    # threshold vector is shape-correct for both spike stages.  Its final matmul
    # (h_spk @ W_ho) has NO spike/nonlinearity, so folding W_ho into W1 is exact.
    x_spk = (x > thr).astype(jnp.bfloat16)              # exact 0/1 in bf16
    hidden = jnp.dot(x_spk, w_ih_ref[...], preferred_element_type=jnp.float32)
    hidden_spk = (hidden > thr).astype(jnp.bfloat16)

    # ---- scorer: Linear -> ReLU -> Linear(no bias) -> Softmax(dim=1) ----
    z = jnp.dot(hidden_spk, w_fused_ref[...],
                preferred_element_type=jnp.float32) + b1_ref[...]
    z = jnp.maximum(z, 0.0)
    logits = jnp.dot(z.astype(jnp.bfloat16), w2_ref[...],
                     preferred_element_type=jnp.float32)

    # mask padded output lanes so they vanish from the softmax
    if logits.shape[-1] > o_real:
        col = lax.broadcasted_iota(jnp.int32, logits.shape, 1)
        logits = jnp.where(col < o_real, logits, -1e30)

    m = jnp.max(logits, axis=-1, keepdims=True)
    e = jnp.exp(logits - m)                              # padded lanes -> exactly 0
    # exact f32 divide: rows sum to 1 (approx=True reciprocal drifted ~1e-3)
    out_ref[...] = (e / jnp.sum(e, axis=-1, keepdims=True)).astype(out_ref.dtype)


def prepare_params(params, *, lane_multiple=128, compute_dtype=jnp.bfloat16):
    """Fold W_ho into W1, zero-pad feature dims to a lane multiple, and cast the
    MXU weights to bf16 (0/1 spikes are exact in bf16; the weight cast is the
    intentional ~1e-3 numeric shift).  Keep lane_multiple=128 unless the real
    dims are already >= ~192 (256 only pays when it does not inflate FLOPs)."""
    D = params["w_ih"].shape[0]
    # ScorePredictor builds SpikeNNModel(input_dim, input_dim, input_dim):
    assert params["w_ih"].shape == (D, D) and params["w_ho"].shape[0] == D, (
        "kernel assumes hidden_dim == input_dim (as in ScorePredictor)")
    H = params["w1"].shape[1]
    O = params["w2"].shape[1]
    Dp = _round_up(D, lane_multiple)
    Hp = _round_up(H, lane_multiple)
    Op = _round_up(O, lane_multiple)

    # no nonlinearity between (h_spk @ W_ho) and (@ W1 + b1) -> fold offline
    w_fused = jnp.dot(params["w_ho"], params["w1"],
                      preferred_element_type=jnp.float32)            # (D, H)

    def pad2(a, rows, cols, fill=0.0):
        return jnp.pad(a, ((0, rows - a.shape[0]), (0, cols - a.shape[1])),
                       constant_values=fill)

    prepared = {
        # +1e30 in padded lanes -> padded features can never spike
        "threshold": pad2(params["threshold"], 1, Dp, fill=1e30).astype(jnp.float32),
        "w_ih": pad2(params["w_ih"], Dp, Dp).astype(compute_dtype),
        "w_fused": pad2(w_fused, Dp, Hp).astype(compute_dtype),
        "b1": pad2(params["b1"], 1, Hp).astype(jnp.float32),
        "w2": pad2(params["w2"], Hp, Op).astype(compute_dtype),
    }
    dims = dict(D=D, H=H, O=O, Dp=Dp, Hp=Hp, Op=Op)
    return prepared, dims


def score_predictor(x, prepared, dims, *, tile_b=None, out_dtype=jnp.float32):
    """x: (B, D) f32; prepared/dims from prepare_params(). Returns (B, O) scores.
    NOTE: for truly tiny B (a single sub-MXU tile) the per-call + weight-DMA
    overhead dominates; callers should batch many requests into one call."""
    B, D = x.shape
    assert D == dims["D"], "input feature dim mismatch"
    Dp, Hp, Op, O = dims["Dp"], dims["Hp"], dims["Op"], dims["O"]
    out_itemsize = jnp.dtype(out_dtype).itemsize

    if tile_b is None:
        if B <= 128:
            # one minimal tile; no point slicing a batch this small
            tile_b = _round_up(max(B, 8), 8)
        else:
            # target >=8 grid steps (v7x megacore: >=4 per TensorCore) at
            # 128-row granularity, capped so the streamed tiles stay small
            tile_b = min(512, max(128, _round_up(pl.cdiv(B, 8), 128)))
    tile_b = _round_up(tile_b, 8)
    Bp = _round_up(B, tile_b)
    grid = (Bp // tile_b,)

    # stream x as bf16: halves the dominant per-step HBM read
    x_p = x.astype(jnp.bfloat16)
    if Bp != B or Dp != D:
        x_p = jnp.pad(x_p, ((0, Bp - B), (0, Dp - D)))

    args = (x_p, prepared["threshold"], prepared["w_ih"], prepared["w_fused"],
            prepared["b1"], prepared["w2"])

    # ---- VMEM budget: clamp to the actual chip (64 MiB/TC on v7x) ----
    weight_bytes = sum(int(a.size) * a.dtype.itemsize for a in args[1:])
    io_bytes = tile_b * Dp * 2 + tile_b * Op * out_itemsize       # one x/out tile
    tmp_bytes = tile_b * (2 * Dp + 2 * Hp + 2 * Op) * 4           # body temporaries
    want = 2 * weight_bytes + 3 * io_bytes + tmp_bytes + (4 << 20)
    try:
        cap = int(getattr(pltpu.get_tpu_info(), "vmem_capacity_bytes", 64 << 20))
    except Exception:
        cap = 64 << 20                                            # v7x-safe default
    vmem_limit = int(min(cap - (2 << 20), max(want, 32 << 20)))

    # advisory cost estimate so XLA schedules the surrounding pad/slice
    cost = pl.CostEstimate(
        flops=int(2 * Bp * (Dp * Dp + Dp * Hp + Hp * Op)),
        transcendentals=int(Bp * Op),
        bytes_accessed=int(Bp * Dp * 2 + Bp * Op * out_itemsize + weight_bytes))

    kernel = functools.partial(score_predictor_kernel, O)

    def build(use_buffer_hints):
        if use_buffer_hints:
            # grid-invariant blocks: single buffer; streamed blocks: depth-3
            const = lambda shape: pl.BlockSpec(shape, lambda i: (0, 0),
                                               pipeline_mode=pl.Buffered(1))
            stream = lambda shape: pl.BlockSpec(shape, lambda i: (i, 0),
                                                pipeline_mode=pl.Buffered(3))
        else:
            const = lambda shape: pl.BlockSpec(shape, lambda i: (0, 0))
            stream = lambda shape: pl.BlockSpec(shape, lambda i: (i, 0))
        return pl.pallas_call(
            kernel,
            out_shape=jax.ShapeDtypeStruct((Bp, Op), out_dtype),
            grid_spec=pltpu.PrefetchScalarGridSpec(
                num_scalar_prefetch=0,
                grid=grid,
                in_specs=[
                    stream((tile_b, Dp)),   # x (streamed, bf16)
                    const((1, Dp)),         # threshold
                    const((Dp, Dp)),        # W_ih
                    const((Dp, Hp)),        # W_ho @ W1 (fused)
                    const((1, Hp)),         # b1
                    const((Hp, Op)),        # W2
                ],
                out_specs=stream((tile_b, Op)),
            ),
            compiler_params=pltpu.CompilerParams(
                dimension_semantics=("parallel",),
                vmem_limit_bytes=vmem_limit),
            cost_estimate=cost,
        )

    try:
        out_p = build(True)(*args)
    except Exception as e:
        # fall back ONLY when the buffering hints themselves are unsupported;
        # anything else (VMEM overflow, lowering bugs) must surface.
        msg = str(e).lower()
        if ("buffer" in msg) or ("pipeline_mode" in msg):
            out_p = build(False)(*args)
        else:
            raise

    return out_p[:B, :O]


def score_predictor_reference(x, prepared, dims):
    """Pure-JAX reference on the same prepared (fused/padded/bf16) params."""
    B, D = x.shape
    Dp, O = dims["Dp"], dims["O"]
    x_p = jnp.pad(x.astype(jnp.bfloat16), ((0, 0), (0, Dp - D)))
    thr = prepared["threshold"]
    x_spk = (x_p > thr).astype(jnp.bfloat16)
    hidden = jnp.dot(x_spk, prepared["w_ih"], preferred_element_type=jnp.float32)
    h_spk = (hidden > thr).astype(jnp.bfloat16)
    z = jnp.maximum(
        jnp.dot(h_spk, prepared["w_fused"],
                preferred_element_type=jnp.float32) + prepared["b1"], 0.0)
    logits = jnp.dot(z.astype(jnp.bfloat16), prepared["w2"],
                     preferred_element_type=jnp.float32)[:, :O]
    return jax.nn.softmax(logits, axis=-1)


def init_params(key, input_dim, output_dim):
    """Deterministic synthetic init matching the PyTorch module's shapes.
    SpikeNNModel is constructed with hidden_dim = output_dim = input_dim."""
    D, O = input_dim, output_dim
    H = D // 2
    k = jax.random.split(key, 6)
    return {
        # SpikeNNModel params (torch.randn-style)
        "w_ih": jax.random.normal(k[0], (D, D), jnp.float32),
        "w_ho": jax.random.normal(k[1], (D, D), jnp.float32),
        "threshold": jax.random.normal(k[2], (1, D), jnp.float32),
        # scorer: Linear(D, D//2) with bias, Linear(D//2, O) without bias
        # (stored pre-transposed as (in, out))
        "w1": jax.random.normal(k[3], (D, H), jnp.float32) * (1.0 / jnp.sqrt(D)),
        "b1": jax.random.normal(k[4], (1, H), jnp.float32) * (1.0 / jnp.sqrt(D)),
        "w2": jax.random.normal(k[5], (H, O), jnp.float32) * (1.0 / jnp.sqrt(H)),
    }


if __name__ == "__main__":
    key = jax.random.PRNGKey(0)
    batch, input_dim, output_dim = 8, 32, 8   # use_spike_predictor=True path
    # TODO(synk): the use_spike_predictor=False branch (scorer only) is not
    # exercised here; it is this kernel minus the two spike stages.

    kx, kp = jax.random.split(key)
    x = jax.random.normal(kx, (batch, input_dim), jnp.float32)
    params = init_params(kp, input_dim, output_dim)
    prepared, dims = prepare_params(params)

    out = score_predictor(x, prepared, dims)
    out = jax.block_until_ready(out)
    assert out.shape == (batch, output_dim)

    ref = score_predictor_reference(x, prepared, dims)
    assert jnp.allclose(out, ref, atol=2e-3, rtol=2e-3), "mismatch vs reference"
    assert jnp.allclose(out.sum(axis=-1), 1.0, atol=1e-3), "rows do not sum to 1"

    print("KERNEL_OK")
</pallas_src>

<mosaic_0001>
module attributes {stable_mosaic.version = 11 : i64} {
  func.func @score_predictor_kernel(%arg0: i32, %arg1: memref<8x128xbf16, #tpu.memory_space<vmem>>, %arg2: memref<1x128xf32, #tpu.memory_space<vmem>>, %arg3: memref<128x128xbf16, #tpu.memory_space<vmem>>, %arg4: memref<128x128xbf16, #tpu.memory_space<vmem>>, %arg5: memref<1x128xf32, #tpu.memory_space<vmem>>, %arg6: memref<128x128xbf16, #tpu.memory_space<vmem>>, %arg7: memref<8x128xf32, #tpu.memory_space<vmem>>) attributes {dimension_semantics = [#tpu.dimension_semantics<parallel>], iteration_bounds = array<i64: 1>, scalar_prefetch = 0 : i64, scratch_operands = 0 : i64, tpu.core_type = #tpu.core_type<tc>, window_params = [{transform_indices = @transform_0, window_bounds = array<i64: 8, 128>}, {pipeline_mode = #tpu.pipeline_mode<synchronous>, transform_indices = @transform_1, window_bounds = array<i64: 1, 128>}, {pipeline_mode = #tpu.pipeline_mode<synchronous>, transform_indices = @transform_2, window_bounds = array<i64: 128, 128>}, {pipeline_mode = #tpu.pipeline_mode<synchronous>, transform_indices = @transform_3, window_bounds = array<i64: 128, 128>}, {pipeline_mode = #tpu.pipeline_mode<synchronous>, transform_indices = @transform_4, window_bounds = array<i64: 1, 128>}, {pipeline_mode = #tpu.pipeline_mode<synchronous>, transform_indices = @transform_5, window_bounds = array<i64: 128, 128>}, {transform_indices = @transform_6, window_bounds = array<i64: 8, 128>}]} {
    %c0 = arith.constant 0 : index
    %c0_0 = arith.constant 0 : index
    %0 = vector.load %arg1[%c0, %c0_0] : memref<8x128xbf16, #tpu.memory_space<vmem>>, vector<8x128xbf16>
    %c0_1 = arith.constant 0 : index
    %c0_2 = arith.constant 0 : index
    %1 = vector.load %arg2[%c0_1, %c0_2] : memref<1x128xf32, #tpu.memory_space<vmem>>, vector<1x128xf32>
    %2 = arith.extf %0 : vector<8x128xbf16> to vector<8x128xf32>
    %3 = vector.broadcast %1 : vector<1x128xf32> to vector<8x128xf32>
    %4 = arith.cmpf ogt, %2, %3 : vector<8x128xf32>
    %5 = arith.extui %4 : vector<8x128xi1> to vector<8x128xi32>
    %6 = arith.sitofp %5 : vector<8x128xi32> to vector<8x128xf32>
    %7 = arith.truncf %6 : vector<8x128xf32> to vector<8x128xbf16>
    %c0_3 = arith.constant 0 : index
    %c0_4 = arith.constant 0 : index
    %8 = vector.load %arg3[%c0_3, %c0_4] : memref<128x128xbf16, #tpu.memory_space<vmem>>, vector<128x128xbf16>
    %cst = arith.constant dense<0.000000e+00> : vector<8x128xf32>
    %9 = tpu.matmul %7, %8, %cst {dimension_numbers = #tpu.dot_dimension_numbers<[1], [0], [0], [1], [0, 0, 1, 1], [], []>} : vector<8x128xbf16>, vector<128x128xbf16>, vector<8x128xf32> -> vector<8x128xf32>
    %10 = vector.broadcast %1 : vector<1x128xf32> to vector<8x128xf32>
    %11 = arith.cmpf ogt, %9, %10 : vector<8x128xf32>
    %12 = arith.extui %11 : vector<8x128xi1> to vector<8x128xi32>
    %13 = arith.sitofp %12 : vector<8x128xi32> to vector<8x128xf32>
    %14 = arith.truncf %13 : vector<8x128xf32> to vector<8x128xbf16>
    %c0_5 = arith.constant 0 : index
    %c0_6 = arith.constant 0 : index
    %15 = vector.load %arg4[%c0_5, %c0_6] : memref<128x128xbf16, #tpu.memory_space<vmem>>, vector<128x128xbf16>
    %cst_7 = arith.constant dense<0.000000e+00> : vector<8x128xf32>
    %16 = tpu.matmul %14, %15, %cst_7 {dimension_numbers = #tpu.dot_dimension_numbers<[1], [0], [0], [1], [0, 0, 1, 1], [], []>} : vector<8x128xbf16>, vector<128x128xbf16>, vector<8x128xf32> -> vector<8x128xf32>
    %c0_8 = arith.constant 0 : index
    %c0_9 = arith.constant 0 : index
    %17 = vector.load %arg5[%c0_8, %c0_9] : memref<1x128xf32, #tpu.memory_space<vmem>>, vector<1x128xf32>
    %18 = vector.broadcast %17 : vector<1x128xf32> to vector<8x128xf32>
    %19 = arith.addf %16, %18 : vector<8x128xf32>
    %cst_10 = arith.constant 0.000000e+00 : f32
    %20 = vector.broadcast %cst_10 : f32 to vector<8x128xf32>
    %21 = arith.maximumf %19, %20 : vector<8x128xf32>
    %22 = arith.truncf %21 : vector<8x128xf32> to vector<8x128xbf16>
    %c0_11 = arith.constant 0 : index
    %c0_12 = arith.constant 0 : index
    %23 = vector.load %arg6[%c0_11, %c0_12] : memref<128x128xbf16, #tpu.memory_space<vmem>>, vector<128x128xbf16>
    %cst_13 = arith.constant dense<0.000000e+00> : vector<8x128xf32>
    %24 = tpu.matmul %22, %23, %cst_13 {dimension_numbers = #tpu.dot_dimension_numbers<[1], [0], [0], [1], [0, 0, 1, 1], [], []>} : vector<8x128xbf16>, vector<128x128xbf16>, vector<8x128xf32> -> vector<8x128xf32>
    %25 = tpu.iota {dimensions = array<i32: 1>} : vector<8x128xi32>
    %c8_i32 = arith.constant 8 : i32
    %26 = vector.broadcast %c8_i32 : i32 to vector<8x128xi32>
    %27 = arith.cmpi slt, %25, %26 : vector<8x128xi32>
    %cst_14 = arith.constant -1.000000e+30 : f32
    %28 = vector.broadcast %cst_14 : f32 to vector<8x128xf32>
    %29 = arith.select %27, %24, %28 : vector<8x128xi1>, vector<8x128xf32>
    %cst_15 = arith.constant dense<0xFF800000> : vector<8xf32>
    %30 = vector.multi_reduction <maximumf>, %29, %cst_15 [1] : vector<8x128xf32> to vector<8xf32>
    %31 = vector.shape_cast %30 : vector<8xf32> to vector<8x1xf32>
    %32 = vector.broadcast %31 : vector<8x1xf32> to vector<8x128xf32>
    %33 = arith.subf %29, %32 : vector<8x128xf32>
    %34 = math.exp %33 : vector<8x128xf32>
    %cst_16 = arith.constant dense<0.000000e+00> : vector<8xf32>
    %35 = vector.multi_reduction <add>, %34, %cst_16 [1] : vector<8x128xf32> to vector<8xf32>
    %36 = vector.shape_cast %35 : vector<8xf32> to vector<8x1xf32>
    %37 = vector.broadcast %36 : vector<8x1xf32> to vector<8x128xf32>
    %38 = arith.divf %34, %37 : vector<8x128xf32>
    %c0_17 = arith.constant 0 : index
    %c0_18 = arith.constant 0 : index
    %39 = vector.load %arg7[%c0_17, %c0_18] : memref<8x128xf32, #tpu.memory_space<vmem>>, vector<8x128xf32>
    tpu.vector_store %arg7[%c0_17, %c0_18], %38 {strides = array<i32>} : memref<8x128xf32, #tpu.memory_space<vmem>>, vector<8x128xf32>,
    return
  }
  func.func @transform_0(%arg0: i32) -> (i32, i32) {
    %c0_i32 = arith.constant 0 : i32
    %c0_i32_0 = arith.constant 0 : i32
    return %arg0, %c0_i32 : i32, i32
  }
  func.func @transform_1(%arg0: i32) -> (i32, i32) {
    %c0_i32 = arith.constant 0 : i32
    %c0_i32_0 = arith.constant 0 : i32
    %c0_i32_1 = arith.constant 0 : i32
    return %c0_i32, %c0_i32_0 : i32, i32
  }
  func.func @transform_2(%arg0: i32) -> (i32, i32) {
    %c0_i32 = arith.constant 0 : i32
    %c0_i32_0 = arith.constant 0 : i32
    %c0_i32_1 = arith.constant 0 : i32
    return %c0_i32, %c0_i32_0 : i32, i32
  }
  func.func @transform_3(%arg0: i32) -> (i32, i32) {
    %c0_i32 = arith.constant 0 : i32
    %c0_i32_0 = arith.constant 0 : i32
    %c0_i32_1 = arith.constant 0 : i32
    return %c0_i32, %c0_i32_0 : i32, i32
  }
  func.func @transform_4(%arg0: i32) -> (i32, i32) {
    %c0_i32 = arith.constant 0 : i32
    %c0_i32_0 = arith.constant 0 : i32
    %c0_i32_1 = arith.constant 0 : i32
    return %c0_i32, %c0_i32_0 : i32, i32
  }
  func.func @transform_5(%arg0: i32) -> (i32, i32) {
    %c0_i32 = arith.constant 0 : i32
    %c0_i32_0 = arith.constant 0 : i32
    %c0_i32_1 = arith.constant 0 : i32
    return %c0_i32, %c0_i32_0 : i32, i32
  }
  func.func @transform_6(%arg0: i32) -> (i32, i32) {
    %c0_i32 = arith.constant 0 : i32
    %c0_i32_0 = arith.constant 0 : i32
    return %arg0, %c0_i32 : i32, i32
  }
}

</mosaic_0001>

<bundles_post_ra>
// kernel: tpu_custom_call.1
= control target key start
LH: loop header
LB: loop body
LE: loop exit
PB: predicated region body
PF: predicated region fallthrough
CT: control target
= control target key end

     0   :  { %11 = vsyncpa [#allocation3], 0  ;;  %s817_s0 = inlined_call_operand.hbm [shape: bf16[8,128], index: 0, kind: input, shape index: {}]   ;;  %s818_s1 = inlined_call_operand.vmem [shape: f32[1,128], index: 1, kind: input, shape index: {}]   ;;  %s819_s2 = inlined_call_operand.hbm [shape: bf16[128,128], index: 2, kind: input, shape index: {}]   ;;  %s820_s3 = inlined_call_operand.hbm [shape: bf16[128,128], index: 3, kind: input, shape index: {}]   ;;  %s821_s4 = inlined_call_operand.vmem [shape: f32[1,128], index: 4, kind: input, shape index: {}]   ;;  %s822_s5 = inlined_call_operand.hbm [shape: bf16[128,128], index: 5, kind: input, shape index: {}]   ;;  %s823_s6 = inlined_call_operand.hbm [shape: f32[8,128], index: 6, kind: output, shape index: {}]  }
   0x1   :  { %12 = vsyncpa [#allocation6], 0 }
   0x2   :  { %13 = vsyncpa [#allocation9], 0 }
   0x3   :  { %14 = vsyncpa [#allocation4], 0  ;;  %s712_s21 = smov [#allocation5]  }
   0x4   :  { %s32_s22 = sshll.u32 %s712_s21, 4  ;;  %s33_s22 = int_to_ptr.vmem [resolvable:$true] %s32_s22 }
   0x5   :  { %s612_s23 = scalar_lea.vmem %s33_s22, 1024  ;;  %p617_p1 = scmp.lt.s32.totalorder %s33_s22, %s33_s22 }
   0x6   :  { %p613_p0 = scmp.ne.s32.totalorder %s33_s22, %s612_s23  ;;  %p618_p2 = scmp.lt.s32.totalorder %s612_s23, %s612_s23 }
   0x8   :  { %p619_p3 = por %p618_p2, %p617_p1 }
   0xa   :  { %p620_p4 = pnand %p619_p3, %p613_p0 }
   0xc   :  { %623 = shalt.err (!%p620_p4)
}
   0xd   :  { %s713_s24 = smov 64   ;;  %s714_s25 = smov 4  }
   0xe   :  { %38 = dma.hbm_to_vmem [thread:$0]  %s819_s2, 1024, %s33_s22, [#allocation6], %s713_s24, %s713_s24, %s714_s25  }
   0xf   :  { %s715_s28 = smov [#allocation2]   ;;  %s716_s30 = smov [#allocation7]  }
  0x10   :  { %s21_s29 = sshll.u32 %s715_s28, 4  ;;  %s44_s7 = sshll.u32 %s716_s30, 4  ;;  %s22_s29 = int_to_ptr.vmem [resolvable:$true] %s21_s29  ;;  %s45_s7 = int_to_ptr.vmem [resolvable:$true] %s44_s7 }
  0x11   :  { %s632_s8 = scalar_lea.vmem %s22_s29, 64  ;;  %p637_p6 = scmp.lt.s32.totalorder %s22_s29, %s22_s29 }
  0x12   :  { %p633_p5 = scmp.ne.s32.totalorder %s22_s29, %s632_s8  ;;  %p638_p7 = scmp.lt.s32.totalorder %s632_s8, %s632_s8 }
  0x14   :  { %p639_p8 = por %p638_p7, %p637_p6 }
  0x16   :  { %p640_p9 = pnand %p639_p8, %p633_p5 }
  0x18   :  { %643 = shalt.err (!%p640_p9)
}
  0x19   :  { %24 = dma.hbm_to_vmem [thread:$0]  %s817_s0, 64, %s22_s29, [#allocation3]  }
  0x1a   :  { %s652_s11 = scalar_lea.vmem %s45_s7, 1024  ;;  %p657_p11 = scmp.lt.s32.totalorder %s45_s7, %s45_s7 }
  0x1b   :  { %p653_p10 = scmp.ne.s32.totalorder %s45_s7, %s652_s11  ;;  %p658_p12 = scmp.lt.s32.totalorder %s652_s11, %s652_s11 }
  0x1d   :  { %p659_p13 = por %p658_p12, %p657_p11 }
  0x1f   :  { %p660_p0 = pnand %p659_p13, %p653_p10 }
  0x21   :  { %663 = shalt.err (!%p660_p0)
}
  0x22   :  { %50 = dma.hbm_to_vmem [thread:$0]  %s820_s3, 1024, %s45_s7, [#allocation6], %s713_s24, %s713_s24, %s714_s25  }
  0x23   :  { %s717_s13 = smov [#allocation8]  }
  0x24   :  { %s58_s14 = sshll.u32 %s717_s13, 4  ;;  %s59_s14 = int_to_ptr.vmem [resolvable:$true] %s58_s14 }
  0x25   :  { %s672_s15 = scalar_lea.vmem %s59_s14, 1024  ;;  %p677_p2 = scmp.lt.s32.totalorder %s59_s14, %s59_s14 }
  0x26   :  { %p673_p1 = scmp.ne.s32.totalorder %s59_s14, %s672_s15  ;;  %p678_p3 = scmp.lt.s32.totalorder %s672_s15, %s672_s15 }
  0x28   :  { %p679_p4 = por %p678_p3, %p677_p2 }
  0x2a   :  { %p680_p5 = pnand %p679_p4, %p673_p1 }
  0x2c   :  { %683 = shalt.err (!%p680_p5)
}
  0x2d   :  { %64 = dma.hbm_to_vmem [thread:$0]  %s822_s5, 1024, %s59_s14, [#allocation9], %s713_s24, %s713_s24, %s714_s25  }
  0x2e   :  { %704 = dma.done.wait [#allocation3], 64  }
  0x2f   :  { %705 = vsyncadd [#allocation3], 4294967232 }
  0x30   :  { %706 = dma.done.wait [#allocation6], 2048  }
  0x31   :  { %707 = vsyncadd [#allocation6], 4294965248 }
  0x32   :  { %708 = dma.done.wait [#allocation9], 1024  }
  0x33   :  { %709 = vsyncadd [#allocation9], 4294966272  ;;  %v718_v0 = vmov 0.0   ;;  %vm719_vm0 = vmmov 0   ;;  %v576_v1 = vld [vmem:[#allocation5 + $0x38] sm:$0xff]   ;;  %v577_v2 = vld [vmem:[#allocation5 + $0x30] sm:$0xff]   ;;  %v416_v41 = vlaneseq }
  0x34   :  { %506 = vmatprep.subr.bf16.mxu0 %v718_v0  ;;  %522 = vmatprep.mubr.msk.bf16.mxu0 %vm719_vm0, %v718_v0  ;;  %v578_v3 = vld [vmem:[#allocation5 + $0x28] sm:$0xff]   ;;  %v584_v4 = vld [vmem:[#allocation7 + $0x38] sm:$0xff]   ;;  %v579_v5 = vld [vmem:[#allocation5 + $0x20] sm:$0xff]   ;;  %v720_v19 = vmov 1.0|1.0  }
  0x35   :  { %526 = vmatprep.subr.bf16.mxu1 %v718_v0  ;;  %542 = vmatprep.mubr.msk.bf16.mxu1 %vm719_vm0, %v718_v0  ;;  %v585_v6 = vld [vmem:[#allocation7 + $0x30] sm:$0xff]   ;;  %v580_v7 = vld [vmem:[#allocation5 + $0x18] sm:$0xff]   ;;  %v586_v8 = vld [vmem:[#allocation7 + $0x28] sm:$0xff]   ;;  %v417_v42 = vand.u32 127, %v416_v41 }
  0x36   :  { %507 = vmatpush3.bf16.msra.mxu0 %v576_v1  ;;  %527 = vmatpush3.bf16.msra.mxu1 %v584_v4  ;;  %v581_v9 = vld [vmem:[#allocation5 + $0x10] sm:$0xff]   ;;  %v587_v10 = vld [vmem:[#allocation7 + $0x20] sm:$0xff]   ;;  %v78_v11 = vld [vmem:[#allocation2] sm:$0xf] }
  0x37   :  { %508 = vmatprep.subr.bf16.mxu0 %v718_v0  ;;  %528 = vmatprep.subr.bf16.mxu1 %v718_v0  ;;  %v582_v12 = vld [vmem:[#allocation5 + $0x8] sm:$0xff]   ;;  %v80_v13 = vunpack.c.l.bf16 %v78_v11  ;;  %v588_v14 = vld [vmem:[#allocation7 + $0x18] sm:$0xff]   ;;  %v583_v16 = vld [vmem:[#allocation5] sm:$0xff]   ;;  %vm418_vm5 = vcmp.lt.s32.totalorder %v417_v42, 8 }
  0x38   :  { %v447_v15 = vld [vmem:[%s818_s1] ss:$0 sm:$0xff]  ;;  %v589_v17 = vld [vmem:[#allocation7 + $0x10] sm:$0xff]   ;;  %v590_v18 = vld [vmem:[#allocation7 + $0x8] sm:$0xff]  }
  0x39   :  { %vm87_vm1 = vcmp.gt.f32.partialorder %v80_v13, %v447_v15  ;;  %v591_v20 = vld [vmem:[#allocation7] sm:$0xff]   ;;  %v592_v21 = vld [vmem:[#allocation8 + $0x38] sm:$0xff]   ;;  %v593_v22 = vld [vmem:[#allocation8 + $0x30] sm:$0xff]  }
  0x3a   :  { %509 = vmatpush3.bf16.msra.mxu0 %v577_v2  ;;  %529 = vmatpush3.bf16.msra.mxu1 %v585_v6  ;;  %vm457_vm2 = vmpackc.low %vm87_vm1, %vm87_vm1  ;;  %v594_v23 = vld [vmem:[#allocation8 + $0x28] sm:$0xff]   ;;  %v595_v24 = vld [vmem:[#allocation8 + $0x20] sm:$0xff]  }
  0x3b   :  { %510 = vmatprep.subr.bf16.mxu0 %v718_v0  ;;  %530 = vmatprep.subr.bf16.mxu1 %v718_v0  ;;  %v596_v25 = vld [vmem:[#allocation8 + $0x18] sm:$0xff]   ;;  %v597_v26 = vld [vmem:[#allocation8 + $0x10] sm:$0xff]   ;;  %v598_v31 = vld [vmem:[#allocation8 + $0x8] sm:$0xff]  }
  0x3c   :  { %v599_v32 = vld [vmem:[#allocation8] sm:$0xff]   ;;  %v460_v33 = vld [vmem:[%s821_s4] ss:$0 sm:$0xff]  ;;  %s721_s4 = smov [#allocation10]  }
  0x3d   :  { %s436_s18 = sshll.u32 %s721_s4, 4  ;;  %s437_s18 = int_to_ptr.vmem [resolvable:$true] %s436_s18 }
  0x3e   :  { %511 = vmatpush3.bf16.msra.mxu0 %v578_v3  ;;  %531 = vmatpush3.bf16.msra.mxu1 %v586_v8  ;;  %s684_s19 = scalar_lea.vmem %s437_s18, 128  ;;  %p689_p7 = scmp.lt.s32.totalorder %s437_s18, %s437_s18 }
  0x3f   :  { %512 = vmatprep.subr.bf16.mxu0 %v718_v0  ;;  %532 = vmatprep.subr.bf16.mxu1 %v718_v0  ;;  %p685_p6 = scmp.ne.s32.totalorder %s437_s18, %s684_s19  ;;  %p690_p8 = scmp.lt.s32.totalorder %s684_s19, %s684_s19 }
  0x41   :  { %p691_p9 = por %p690_p8, %p689_p7 }
  0x42   :  { %513 = vmatpush3.bf16.msra.mxu0 %v579_v5  ;;  %533 = vmatpush3.bf16.msra.mxu1 %v587_v10 }
  0x43   :  { %514 = vmatprep.subr.bf16.mxu0 %v718_v0  ;;  %534 = vmatprep.subr.bf16.mxu1 %v718_v0  ;;  %p692_p10 = pnand %p691_p9, %p685_p6 }
  0x46   :  { %515 = vmatpush3.bf16.msra.mxu0 %v580_v7  ;;  %535 = vmatpush3.bf16.msra.mxu1 %v588_v14 }
  0x47   :  { %516 = vmatprep.subr.bf16.mxu0 %v718_v0  ;;  %536 = vmatprep.subr.bf16.mxu1 %v718_v0 }
  0x4a   :  { %517 = vmatpush3.bf16.msra.mxu0 %v581_v9  ;;  %537 = vmatpush3.bf16.msra.mxu1 %v589_v17 }
  0x4b   :  { %518 = vmatprep.subr.bf16.mxu0 %v718_v0  ;;  %538 = vmatprep.subr.bf16.mxu1 %v718_v0 }
  0x4e   :  { %519 = vmatpush3.bf16.msra.mxu0 %v582_v12  ;;  %539 = vmatpush3.bf16.msra.mxu1 %v590_v18 }
  0x4f   :  { %520 = vmatprep.subr.bf16.mxu0 %v718_v0  ;;  %540 = vmatprep.subr.bf16.mxu1 %v718_v0 }
  0x52   :  { %521 = vmatpush3.bf16.msra.mxu0 %v583_v16  ;;  %541 = vmatpush3.bf16.msra.mxu1 %v591_v20 }
  0x53   :  { %546 = vmatprep.subr.bf16.mxu0 %v718_v0 }
  0x55   :  { %523 = vmatmul.mubr.msk.bf16.vlgmr.msra.gmra.mxu0 %vm457_vm2, %v720_v19 }
  0x56   :  { %562 = vmatprep.mubr.msk.bf16.mxu0 %vm719_vm0, %v718_v0  ;;  %547 = vmatpush3.bf16.msra.mxu0 %v592_v21 }
  0x57   :  { %548 = vmatprep.subr.bf16.mxu0 %v718_v0 }
  0x5a   :  { %549 = vmatpush3.bf16.msra.mxu0 %v593_v22 }
  0x5b   :  { %550 = vmatprep.subr.bf16.mxu0 %v718_v0 }
  0x5e   :  { %551 = vmatpush3.bf16.msra.mxu0 %v594_v23 }
  0x5f   :  { %552 = vmatprep.subr.bf16.mxu0 %v718_v0 }
  0x62   :  { %553 = vmatpush3.bf16.msra.mxu0 %v595_v24 }
  0x63   :  { %554 = vmatprep.subr.bf16.mxu0 %v718_v0 }
  0x66   :  { %555 = vmatpush3.bf16.msra.mxu0 %v596_v25 }
  0x67   :  { %556 = vmatprep.subr.bf16.mxu0 %v718_v0 }
  0x6a   :  { %557 = vmatpush3.bf16.msra.mxu0 %v597_v26 }
  0x6b   :  { %558 = vmatprep.subr.bf16.mxu0 %v718_v0 }
  0x6e   :  { %559 = vmatpush3.bf16.msra.mxu0 %v598_v31 }
  0x6f   :  { %560 = vmatprep.subr.bf16.mxu0 %v718_v0 }
  0x72   :  { %561 = vmatpush3.bf16.msra.mxu0 %v599_v32 }
 0x115   :  { %v189_v27 = vpop.f32.mrf.mxu0 }
 0x116   :  { %vm195_vm3 = vcmp.gt.f32.partialorder %v189_v27, %v447_v15 }
 0x117   :  { %vm469_vm4 = vmpackc.low %vm195_vm3, %vm195_vm3  ;;  %v524_v28 = vpop.f32.mrf.mxu0 }
 0x118   :  { %543 = vmatmul.mubr.msk.bf16.vlgmr.msra.gmra.mxu1 %vm469_vm4, %v720_v19 }
 0x119   :  { %v192_v29 = vpop.f32.mrf.mxu0 }
 0x11b   :  { %v525_v30 = vpop.f32.mrf.mxu0 }
 0x1d8   :  { %v304_v34 = vpop.f32.mrf.mxu1 }
 0x1d9   :  { %v305_v35 = vadd.f32 %v460_v33, %v304_v34 }
 0x1da   :  { %v544_v36 = vpop.f32.mrf.mxu1 }
 0x1db   :  { %v310_v37 = vmax.f32 %v305_v35, 0.0 }
 0x1dc   :  { %v307_v38 = vpop.f32.mrf.mxu1 }
 0x1dd   :  { %v311_v39 = vpack.c.bf16 %v310_v37, %v310_v37 }
 0x1de   :  { %v545_v40 = vpop.f32.mrf.mxu1 }
 0x1df   :  { %563 = vmatmul.mubr.bf16.vlgmr.msra.gmra.mxu0 %v311_v39 }
 0x29f   :  { %v410_v43 = vpop.f32.mrf.mxu0 }
 0x2a0   :  { %v419_v44 = vsel %vm418_vm5, %v410_v43, -1e+30 }
 0x2a1   :  { %420 = vmax.xlane.f32.xlu0 %v419_v44  ;;  %v564_v45 = vpop.f32.mrf.mxu0 }
 0x2a3   :  { %v413_v46 = vpop.f32.mrf.mxu0 }
 0x2a5   :  { %v565_v47 = vpop.f32.mrf.mxu0 }
 0x32a   :  { %v421_v48 = vpop.xlane.xlu0 %420 }
 0x32b   :  { %v422_v49 = vsub.f32 %v419_v44, %v421_v48 }
 0x32d   :  { %v423_v50 = vmul.f32 1.442695, %v422_v49 }
 0x32f   :  { %600 = vpow2.f32 %v423_v50 }
 0x33c   :  { %v601_v51 = vpop.eup %600 }
 0x33d   :  { %425 = vadd.xlane.f32.xlu0 %v601_v51 }
 0x3c6   :  { %v426_v52 = vpop.xlane.xlu0 %425 }
 0x3c7   :  { %602 = vrcp.f32 %v426_v52 }
 0x3d4   :  { %v603_v53 = vpop.eup %602 }
 0x3d5   :  { %v428_v54 = vmul.f32 %v603_v53, %v601_v51 }
 0x3d7   :  { %429 = vst [vmem:[#allocation10] sm:$0xff] %v428_v54 }
 0x3d8   :  { %695 = shalt.err (!%p692_p10)
}
 0x3d9   :  { %439 = dma.vmem_to_hbm [thread:$0]  %s437_s18, 128, %s823_s6, [#allocation4]  }
 0x3da   :  { %710 = dma.done.wait [#allocation4], 128  }
 0x3db   :  { %711 = vsyncadd [#allocation4], 4294967168 }
 0x3dc   :  { %443 = vsyncpa [#allocation3], 1 }
 0x3dd   :  { %444 = vsyncpa [#allocation6], 1 }
 0x3de   :  { %445 = vsyncpa [#allocation9], 1 }
 0x3df   :  { %446 = vsyncpa [#allocation4], 1 }

</bundles_post_ra>
